<compile_context>
chip_gen: v5e
topology: v5e:2x2
jax: 0.10.0
libtpu: 0.0.40
codegen_flags: <defaults>
</compile_context>

<pallas_src>
import functools

import jax
import jax.numpy as jnp
from jax.experimental import pallas as pl
from jax.experimental.pallas import tpu as pltpu

NUM_CORES = 2  # leading "parallel" grid axis; splits tiles across TCs on megacore parts


def _round_up(x, m):
    return (x + m - 1) // m * m


def _alpha_loss_kernel(y_value_ref, value_ref, y_policy_ref, policy_ref,
                       out_ve_ref, out_pe_ref, *,
                       batch, tile_rows, tiles_per_core, inv_value_n):
    c = pl.program_id(0)   # core / parallel index
    i = pl.program_id(1)   # per-core batch-tile index (reduction axis)

    @pl.when(i == 0)
    def _init():
        # Zero this core's policy accumulator (the output block is resident in
        # VMEM across the whole inner reduction axis).
        out_pe_ref[...] = jnp.zeros_like(out_pe_ref)
        # Value MSE: tiny, resident-in-VMEM inputs; computed once.  Only the
        # c == 0 slot carries a nonzero result (gate), the other row is zeros.
        yv = y_value_ref[...].astype(jnp.float32)
        v = value_ref[...].astype(jnp.float32)
        d = v - yv
        ve = jnp.sum(d * d) * jnp.float32(inv_value_n)
        gate = (c == 0).astype(jnp.float32)
        out_ve_ref[...] = jnp.zeros_like(out_ve_ref) + ve * gate

    # ---- policy cross-entropy term for this batch tile ---------------------
    yp = y_policy_ref[...].astype(jnp.float32)
    p = policy_ref[...].astype(jnp.float32)
    contrib = -p * jnp.log(jnp.float32(1e-6) + yp)

    # Mask rows past the true batch size: handles ragged batches (partial tail
    # tile) and the clamped / out-of-range tiles of the second core.  A select
    # (not arithmetic), so garbage / NaN in the padded region cannot leak in.
    tile_idx = c * tiles_per_core + i
    row0 = tile_idx * tile_rows
    rows = jax.lax.broadcasted_iota(jnp.int32, contrib.shape, 0) + row0
    contrib = jnp.where(rows < batch, contrib, jnp.float32(0.0))

    # Deferred cross-lane reduction: accumulate a lane-dense (1, A) partial
    # sum; the final tiny lane/core reduce happens in the wrapper.
    out_pe_ref[...] += jnp.sum(contrib, axis=0, keepdims=True)


def _choose_batch_tile(batch, actions, dtype, target_bytes=2 * 1024 * 1024):
    """Batch-tile rows: ~2 MiB per input buffer, sublane-granularity aligned."""
    itemsize = jnp.dtype(dtype).itemsize
    mult = max(8, 32 // itemsize)        # f32: 8, bf16: 16, 8-bit: 32 sublane packing
    tb = max(mult, (target_bytes // max(1, actions * itemsize)) // mult * mult)
    tb = min(tb, _round_up(batch, mult))
    return tb


def alpha_loss(y_value, value, y_policy, policy):
    """AlphaZero loss. Returns (value_error, policy_error) as float32 scalars.

    The kernel is HBM-bandwidth bound on the policy tensors; feeding them as
    bfloat16 halves HBM traffic (all arithmetic is performed in float32
    inside the kernel).  Policies stored with the action axis pre-padded to a
    multiple of 128 with zeros are also fine (zero columns contribute 0).
    """
    B, A = policy.shape
    assert y_policy.shape == (B, A)
    assert value.size == y_value.size

    # ---- tiny value tensors: lane-dense, f32, resident in VMEM -------------
    v_flat = jnp.reshape(value, (-1,)).astype(jnp.float32)
    yv_flat = jnp.reshape(y_value, (-1,)).astype(jnp.float32)
    n_val = v_flat.shape[0]
    n_val_pad = _round_up(n_val, 128)
    # Zero padding -> squared diff of padding is exactly 0.
    v2d = jnp.pad(v_flat, (0, n_val_pad - n_val)).reshape(-1, 128)
    yv2d = jnp.pad(yv_flat, (0, n_val_pad - n_val)).reshape(-1, 128)
    rows_v = v2d.shape[0]

    # ---- batch-tiled policy tensors (no wrapper-side padding) --------------
    tb = _choose_batch_tile(B, A, policy.dtype)
    total_tiles = pl.cdiv(B, tb)
    tiles_per_core = pl.cdiv(total_tiles, NUM_CORES)
    grid = (NUM_CORES, tiles_per_core)

    def policy_index_map(c, i):
        # Clamp so out-of-range tiles (2nd core's tail) stay in bounds; their
        # rows are fully masked inside the kernel.
        return (jnp.minimum(c * tiles_per_core + i, total_tiles - 1), 0)

    kernel = functools.partial(
        _alpha_loss_kernel,
        batch=B,
        tile_rows=tb,
        tiles_per_core=tiles_per_core,
        inv_value_n=1.0 / float(n_val),
    )

    out_ve, out_pe = pl.pallas_call(
        kernel,
        grid=grid,
        out_shape=(
            jax.ShapeDtypeStruct((NUM_CORES, 8, 128), jnp.float32),  # value partial per core
            jax.ShapeDtypeStruct((NUM_CORES, 1, A), jnp.float32),    # policy partial per core
        ),
        in_specs=[
            # value tensors: resident in VMEM (constant index map)
            pl.BlockSpec((rows_v, 128), lambda c, i: (0, 0)),
            pl.BlockSpec((rows_v, 128), lambda c, i: (0, 0)),
            # policy tensors: streamed along the batch, auto double-buffered
            pl.BlockSpec((tb, A), policy_index_map),
            pl.BlockSpec((tb, A), policy_index_map),
        ],
        out_specs=(
            pl.BlockSpec((None, 8, 128), lambda c, i: (c, 0, 0)),
            pl.BlockSpec((None, 1, A), lambda c, i: (c, 0, 0)),
        ),
        compiler_params=pltpu.CompilerParams(
            dimension_semantics=("parallel", "arbitrary"),
            vmem_limit_bytes=48 * 1024 * 1024,
        ),
    )(yv2d, v2d, y_policy, policy)

    # Tiny final combines (cross-core + cross-lane) in the wrapper.
    value_error = out_ve[0, 0, 0]
    policy_error = jnp.sum(out_pe) * jnp.float32(1.0 / B)
    return value_error, policy_error


if __name__ == "__main__":
    key = jax.random.PRNGKey(0)
    keys = jax.random.split(key, 12)

    def ref_loss(y_value, value, y_policy, policy):
        yv = y_value.astype(jnp.float32)
        v = value.astype(jnp.float32)
        yp = y_policy.astype(jnp.float32)
        p = policy.astype(jnp.float32)
        ve = jnp.mean((v - yv) ** 2)
        pe = jnp.mean(jnp.sum(-p * jnp.log(1e-6 + yp), axis=1))
        return ve, pe

    def check(B, A, ks, dtype=jnp.float32, rtol=1e-5, atol=1e-6):
        k1, k2, k3, k4 = ks
        # value head targets/predictions in [-1, 1], shape (B, 1)
        y_value = jnp.tanh(jax.random.normal(k1, (B, 1), jnp.float32)).astype(dtype)
        value = jnp.tanh(jax.random.normal(k2, (B, 1), jnp.float32)).astype(dtype)
        # policy head: probability distributions over A actions, shape (B, A)
        y_policy = jax.nn.softmax(jax.random.normal(k3, (B, A), jnp.float32), -1).astype(dtype)
        policy = jax.nn.softmax(jax.random.normal(k4, (B, A), jnp.float32), -1).astype(dtype)

        ve, pe = alpha_loss(y_value, value, y_policy, policy)
        jax.block_until_ready((ve, pe))

        ve_r, pe_r = ref_loss(y_value, value, y_policy, policy)
        assert jnp.allclose(ve, ve_r, rtol=rtol, atol=atol), (B, A, str(dtype), ve, ve_r)
        assert jnp.allclose(pe, pe_r, rtol=rtol, atol=atol), (B, A, str(dtype), pe, pe_r)

    check(8, 128, keys[0:4])                                        # lane-aligned
    check(10, 96, keys[4:8])                                        # ragged batch + non-128 A (mask path)
    check(12, 64, keys[8:12], dtype=jnp.bfloat16, rtol=1e-4, atol=1e-5)  # bf16 feed (halved HBM bytes)

    print("KERNEL_OK")
</pallas_src>

<mosaic_0001>
module attributes {stable_mosaic.version = 11 : i64} {
  func.func @_alpha_loss_kernel(%arg0: i32, %arg1: i32, %arg2: memref<1x128xf32, #tpu.memory_space<vmem>>, %arg3: memref<1x128xf32, #tpu.memory_space<vmem>>, %arg4: memref<8x128xf32, #tpu.memory_space<vmem>>, %arg5: memref<8x128xf32, #tpu.memory_space<vmem>>, %arg6: memref<1x8x128xf32, #tpu.memory_space<vmem>>, %arg7: memref<1x1x128xf32, #tpu.memory_space<vmem>>) attributes {dimension_semantics = [#tpu.dimension_semantics<parallel>, #tpu.dimension_semantics<arbitrary>], iteration_bounds = array<i64: 2, 1>, scalar_prefetch = 0 : i64, scratch_operands = 0 : i64, tpu.core_type = #tpu.core_type<tc>, window_params = [{pipeline_mode = #tpu.pipeline_mode<synchronous>, transform_indices = @transform_0, window_bounds = array<i64: 1, 128>}, {pipeline_mode = #tpu.pipeline_mode<synchronous>, transform_indices = @transform_1, window_bounds = array<i64: 1, 128>}, {transform_indices = @transform_2, window_bounds = array<i64: 8, 128>}, {transform_indices = @transform_3, window_bounds = array<i64: 8, 128>}, {transform_indices = @transform_4, window_bounds = array<i64: 1, 8, 128>}, {transform_indices = @transform_5, window_bounds = array<i64: 1, 1, 128>}]} {
    %c0_i32 = arith.constant 0 : i32
    %0 = arith.cmpi eq, %arg1, %c0_i32 : i32
    %1 = arith.extui %0 : i1 to i32
    %c0_i32_0 = arith.constant 0 : i32
    %2 = arith.cmpi ne, %1, %c0_i32_0 : i32
    scf.if %2 {
      %cst_14 = arith.constant 0.000000e+00 : f32
      %29 = vector.broadcast %cst_14 : f32 to vector<1x128xf32>
      %c0_15 = arith.constant 0 : index
      %c0_16 = arith.constant 0 : index
      %c0_17 = arith.constant 0 : index
      %30 = vector.load %arg7[%c0_15, %c0_16, %c0_17] : memref<1x1x128xf32, #tpu.memory_space<vmem>>, vector<1x1x128xf32>
      %31 = vector.shape_cast %30 : vector<1x1x128xf32> to vector<1x128xf32>
      %32 = vector.shape_cast %29 : vector<1x128xf32> to vector<1x1x128xf32>
      tpu.vector_store %arg7[%c0_15, %c0_16, %c0_17], %32 {strides = array<i32>} : memref<1x1x128xf32, #tpu.memory_space<vmem>>, vector<1x1x128xf32>,
      %c0_18 = arith.constant 0 : index
      %c0_19 = arith.constant 0 : index
      %33 = vector.load %arg2[%c0_18, %c0_19] : memref<1x128xf32, #tpu.memory_space<vmem>>, vector<1x128xf32>
      %c0_20 = arith.constant 0 : index
      %c0_21 = arith.constant 0 : index
      %34 = vector.load %arg3[%c0_20, %c0_21] : memref<1x128xf32, #tpu.memory_space<vmem>>, vector<1x128xf32>
      %35 = arith.subf %34, %33 : vector<1x128xf32>
      %36 = arith.mulf %35, %35 : vector<1x128xf32>
      %37 = vector.shape_cast %36 : vector<1x128xf32> to vector<1x1x128xf32>
      %cst_22 = arith.constant dense<0.000000e+00> : vector<1xf32>
      %38 = vector.multi_reduction <add>, %37, %cst_22 [1, 2] : vector<1x1x128xf32> to vector<1xf32>
      %39 = vector.shape_cast %38 : vector<1xf32> to vector<1x1x1xf32>
      %40 = vector.extract %39[0, 0, 0] : f32 from vector<1x1x1xf32>
      %cst_23 = arith.constant 1.250000e-01 : f32
      %41 = arith.mulf %40, %cst_23 : f32
      %c0_i32_24 = arith.constant 0 : i32
      %42 = arith.cmpi eq, %arg0, %c0_i32_24 : i32
      %43 = arith.extui %42 : i1 to i32
      %44 = arith.sitofp %43 : i32 to f32
      %cst_25 = arith.constant 0.000000e+00 : f32
      %45 = vector.broadcast %cst_25 : f32 to vector<8x128xf32>
      %46 = arith.mulf %41, %44 : f32
      %47 = vector.broadcast %46 : f32 to vector<8x128xf32>
      %48 = arith.addf %45, %47 : vector<8x128xf32>
      %c0_26 = arith.constant 0 : index
      %c0_27 = arith.constant 0 : index
      %c0_28 = arith.constant 0 : index
      %49 = vector.load %arg6[%c0_26, %c0_27, %c0_28] : memref<1x8x128xf32, #tpu.memory_space<vmem>>, vector<1x8x128xf32>
      %50 = vector.shape_cast %49 : vector<1x8x128xf32> to vector<8x128xf32>
      %51 = vector.shape_cast %48 : vector<8x128xf32> to vector<1x8x128xf32>
      tpu.vector_store %arg6[%c0_26, %c0_27, %c0_28], %51 {strides = array<i32>} : memref<1x8x128xf32, #tpu.memory_space<vmem>>, vector<1x8x128xf32>,
    } else {
    }
    %c0 = arith.constant 0 : index
    %c0_1 = arith.constant 0 : index
    %3 = vector.load %arg4[%c0, %c0_1] : memref<8x128xf32, #tpu.memory_space<vmem>>, vector<8x128xf32>
    %c0_2 = arith.constant 0 : index
    %c0_3 = arith.constant 0 : index
    %4 = vector.load %arg5[%c0_2, %c0_3] : memref<8x128xf32, #tpu.memory_space<vmem>>, vector<8x128xf32>
    %cst = arith.constant 0.000000e+00 : f32
    %5 = vector.broadcast %cst : f32 to vector<8x128xf32>
    %6 = arith.subf %5, %4 : vector<8x128xf32>
    %cst_4 = arith.constant 9.99999997E-7 : f32
    %7 = vector.broadcast %cst_4 : f32 to vector<8x128xf32>
    %8 = arith.addf %7, %3 : vector<8x128xf32>
    %9 = math.log %8 : vector<8x128xf32>
    %10 = arith.mulf %6, %9 : vector<8x128xf32>
    %c1_i32 = arith.constant 1 : i32
    %11 = arith.muli %arg0, %c1_i32 : i32
    %12 = arith.addi %11, %arg1 : i32
    %c8_i32 = arith.constant 8 : i32
    %13 = arith.muli %12, %c8_i32 : i32
    %14 = tpu.iota {dimensions = array<i32: 0>} : vector<8x128xi32>
    %15 = vector.broadcast %13 : i32 to vector<8x128xi32>
    %16 = arith.addi %14, %15 : vector<8x128xi32>
    %c8_i32_5 = arith.constant 8 : i32
    %17 = vector.broadcast %c8_i32_5 : i32 to vector<8x128xi32>
    %18 = arith.cmpi slt, %16, %17 : vector<8x128xi32>
    %cst_6 = arith.constant 0.000000e+00 : f32
    %19 = vector.broadcast %cst_6 : f32 to vector<8x128xf32>
    %20 = arith.select %18, %10, %19 : vector<8x128xi1>, vector<8x128xf32>
    %c0_7 = arith.constant 0 : index
    %c0_8 = arith.constant 0 : index
    %c0_9 = arith.constant 0 : index
    %21 = vector.load %arg7[%c0_7, %c0_8, %c0_9] : memref<1x1x128xf32, #tpu.memory_space<vmem>>, vector<1x1x128xf32>
    %22 = vector.shape_cast %21 : vector<1x1x128xf32> to vector<1x128xf32>
    %cst_10 = arith.constant dense<0.000000e+00> : vector<128xf32>
    %23 = vector.multi_reduction <add>, %20, %cst_10 [0] : vector<8x128xf32> to vector<128xf32>
    %24 = vector.shape_cast %23 : vector<128xf32> to vector<1x128xf32>
    %25 = arith.addf %22, %24 : vector<1x128xf32>
    %c0_11 = arith.constant 0 : index
    %c0_12 = arith.constant 0 : index
    %c0_13 = arith.constant 0 : index
    %26 = vector.load %arg7[%c0_11, %c0_12, %c0_13] : memref<1x1x128xf32, #tpu.memory_space<vmem>>, vector<1x1x128xf32>
    %27 = vector.shape_cast %26 : vector<1x1x128xf32> to vector<1x128xf32>
    %28 = vector.shape_cast %25 : vector<1x128xf32> to vector<1x1x128xf32>
    tpu.vector_store %arg7[%c0_11, %c0_12, %c0_13], %28 {strides = array<i32>} : memref<1x1x128xf32, #tpu.memory_space<vmem>>, vector<1x1x128xf32>,
    return
  }
  func.func @transform_0(%arg0: i32, %arg1: i32) -> (i32, i32) {
    %c0_i32 = arith.constant 0 : i32
    %c0_i32_0 = arith.constant 0 : i32
    %c0_i32_1 = arith.constant 0 : i32
    return %c0_i32, %c0_i32_0 : i32, i32
  }
  func.func @transform_1(%arg0: i32, %arg1: i32) -> (i32, i32) {
    %c0_i32 = arith.constant 0 : i32
    %c0_i32_0 = arith.constant 0 : i32
    %c0_i32_1 = arith.constant 0 : i32
    return %c0_i32, %c0_i32_0 : i32, i32
  }
  func.func @transform_2(%arg0: i32, %arg1: i32) -> (i32, i32) {
    %c1_i32 = arith.constant 1 : i32
    %0 = arith.muli %arg0, %c1_i32 : i32
    %1 = arith.addi %0, %arg1 : i32
    %c0_i32 = arith.constant 0 : i32
    %2 = arith.minsi %1, %c0_i32 : i32
    %c0_i32_0 = arith.constant 0 : i32
    %c0_i32_1 = arith.constant 0 : i32
    return %2, %c0_i32_0 : i32, i32
  }
  func.func @transform_3(%arg0: i32, %arg1: i32) -> (i32, i32) {
    %c1_i32 = arith.constant 1 : i32
    %0 = arith.muli %arg0, %c1_i32 : i32
    %1 = arith.addi %0, %arg1 : i32
    %c0_i32 = arith.constant 0 : i32
    %2 = arith.minsi %1, %c0_i32 : i32
    %c0_i32_0 = arith.constant 0 : i32
    %c0_i32_1 = arith.constant 0 : i32
    return %2, %c0_i32_0 : i32, i32
  }
  func.func @transform_4(%arg0: i32, %arg1: i32) -> (i32, i32, i32) {
    %c0_i32 = arith.constant 0 : i32
    %c0_i32_0 = arith.constant 0 : i32
    %c0_i32_1 = arith.constant 0 : i32
    return %arg0, %c0_i32, %c0_i32_0 : i32, i32, i32
  }
  func.func @transform_5(%arg0: i32, %arg1: i32) -> (i32, i32, i32) {
    %c0_i32 = arith.constant 0 : i32
    %c0_i32_0 = arith.constant 0 : i32
    %c0_i32_1 = arith.constant 0 : i32
    return %arg0, %c0_i32, %c0_i32_0 : i32, i32, i32
  }
}

</mosaic_0001>

<bundles_post_ra>
// kernel: tpu_custom_call.1
= control target key start
LH: loop header
LB: loop body
LE: loop exit
PB: predicated region body
PF: predicated region fallthrough
CT: control target
= control target key end

     0   :  { %s1243_s0 = inlined_call_operand.hbm [shape: f32[1,128], index: 0, kind: input, shape index: {}]   ;;  %s1244_s1 = inlined_call_operand.hbm [shape: f32[1,128], index: 1, kind: input, shape index: {}]   ;;  %s1245_s2 = inlined_call_operand.hbm [shape: f32[8,128], index: 2, kind: input, shape index: {}]   ;;  %s1246_s3 = inlined_call_operand.hbm [shape: f32[8,128], index: 3, kind: input, shape index: {}]   ;;  %s1247_s4 = inlined_call_operand.hbm [shape: f32[2,8,128], index: 4, kind: output, shape index: {0}]   ;;  %s1248_s5 = inlined_call_operand.hbm [shape: f32[2,1,128], index: 5, kind: output, shape index: {1}]  }
   0x1   :  { %1251 = sst [smem:[#allocation19_spill]] %s1243_s0 }
   0x2   :  { %1252 = sst [smem:[#allocation20_spill]] %s1244_s1 }
   0x3   :  { %11 = vsyncpa [#allocation3], 0 }
   0x4   :  { %12 = vsyncpa [#allocation6], 0 }
   0x5   :  { %13 = vsyncpa [#allocation4], 0 }
   0x6   :  { %15 = vsyncpa [#allocation4 + $0x1], 0 }
   0x7   :  { %16 = vsyncpa [#allocation11], 0 }
   0x8   :  { %18 = vsyncpa [#allocation11 + $0x1], 0  ;;  %s1024_s18 = smov 0   ;;  %s1026_s19 = smov 0  }
   0x9   :  { %s1028_s20 = smov 0   ;;  %s1030_s21 = smov 0  }
   0xa   :  { %s1032_s22 = smov 0   ;;  %s1034_s23 = smov 0  }
   0xb   :  { %s1036_s24 = smov 0   ;;  %s1038_s25 = smov 0  }
   0xc LB: > { %1253 = sst [smem:[#allocation17_spill]] %s983_s24  ;;  %s1063_s26 = sadd.s32 4294967295, %s987_s25   ;;  %s987_s25 = sphi %s1038_s25, %s24_s25   ;;  %s983_s24 = sphi %s1036_s24, %s1264_s24   ;;  %s979_s23 = sphi %s1034_s23, %s1263_s23   ;;  %s975_s22 = sphi %s1032_s22, %s1233_s22   ;;  %s971_s21 = sphi %s1030_s21, %s1268_s21   ;;  %s967_s20 = sphi %s1028_s20, %s1267_s20   ;;  %s963_s19 = sphi %s1026_s19, %s1266_s19   ;;  %s959_s18 = sphi %s1024_s18, %s1265_s18  }
   0xd   : > { %s582_s27 = sadd.s32 4294967294, %s987_s25   ;;  %p104_p0 = scmp.ne.s32.totalorder %s975_s22, %s971_s21 }
   0xe   : > { %p105_p1 = scmp.eq.s32.totalorder %s1063_s26, 0  ;;  %s149_s28 = sadd.s32 1, %s967_s20 }
   0xf   : > { %p159_p2 = scmp.ne.s32.totalorder %s967_s20, %s963_s19  ;;  %p160_p4 = scmp.eq.s32.totalorder %s1063_s26, 1 }
  0x10   : > { %p1073_p3 = por %p105_p1, %p104_p0  ;;  %p165_p5 = scmp.ne.s32.totalorder %s963_s19, %s959_s18 }
  0x11   : > { %p166_p6 = scmp.eq.s32.totalorder %s582_s27, 1  ;;  %p1080_p7 = por %p160_p4, %p159_p2 }
  0x12   : > { %p583_p8 = scmp.ge.s32.totalorder %s987_s25, 1  ;;  %p199_p10 = scmp.lt.s32.totalorder %s987_s25, 3 }
  0x13   : > { %p1085_p9 = por %p166_p6, %p165_p5  ;;  %s1257_s0 = sld [smem:[#allocation19_spill]] }
  0x14   : > { %p1093_p11 = pnand %p583_p8, %p199_p10  ;;  %p586_p12 = scmp.ge.s32.totalorder %s987_s25, 2 }
  0x15   : > { %s989_s11 = smov [#allocation2]   ;;  %s36_s14 = sadd.s32 1, %s983_s24 }
  0x16   : > { %p620_p13 = pneg %p1093_p11  ;;  %s213_s12 = sshll.u32 %s989_s11, 4  ;;  %s214_s12 = int_to_ptr.vmem [resolvable:$true] %s213_s12 }
  0x17   : > { %p38_p2 = scmp.ge.s32.totalorder %s36_s14, 2  ;;  %p956_p4 = scmp.ne.s32.totalorder %s975_s22, 0 }
  0x18   : > { %p1102_p0 = pnand %p620_p13, %p105_p1  ;;  %p99_p5 = scmp.eq.s32.totalorder %s987_s25, 0 }
  0x19   : > { %s211_s9 = sshll.u32 %s1257_s0, 4  ;;  %s1270_s14 = smov (%p38_p2, %s36_s14), 0  ;;  %s212_s9 = int_to_ptr.hbm [resolvable:$true] %s211_s9 }
  0x1a   : > { %623 = dma.hbm_to_vmem [thread:$0]  (!%p1102_p0), %s212_s9, 16, %s214_s12, [#allocation3]  }
  0x1b   : > { %1260 = sst [smem:[#allocation18_spill]] %s1270_s14  ;;  %s146_s15 = ssub.s32 %s983_s24, %s1270_s14 }
  0x1c   : > { %p643_p6 = scmp.lt.s32.totalorder %s987_s25, 2  ;;  %p100_p8 = por %p956_p4, %p99_p5 }
  0x1d   : > { %p147_p10 = scmp.eq.s32.totalorder %s146_s15, 0  ;;  %s236_s16 = sand.u32 1, %s987_s25  }
  0x1e   : > { %s249_s7 = sshll.u32 %s1245_s2, 4  ;;  %s990_s8 = smov [#allocation7]   ;;  %s250_s7 = int_to_ptr.hbm [resolvable:$true] %s249_s7 }
  0x1f   : > { %s1120_s17 = scalar_select %p147_p10, %s967_s20, %s149_s28  }
  0x20   : > { %s251_s9 = sshll.u32 %s990_s8, 4  ;;  %p1125_p13 = pnand %p643_p6, %p100_p8  ;;  %s252_s9 = int_to_ptr.vmem [resolvable:$true] %s251_s9 }
  0x21   : > { %s1262_s1 = sld [smem:[#allocation20_spill]]  ;;  %s1132_s28 = scalar_lea.sflag [#allocation3], %s236_s16 }
  0x22   : > { %s754_s14 = sshra.s32 %s250_s7, 4  ;;  %p758_p4 = pneg %p1125_p13  ;;  %s755_s14 = int_to_ptr.hbm [resolvable:$true] %s754_s14 }
  0x23   : > { %s756_s21 = scalar_lea.hbm %s755_s14, 8  ;;  %s761_s0 = scalar_lea.hbm %s1245_s2, 8 }
  0x24   : > { %p757_p2 = scmp.ne.s32.totalorder %s755_s14, %s756_s21  ;;  %p763_p8 = scmp.lt.s32.totalorder %s761_s0, %s756_s21 }
  0x26   : > { %p759_p5 = pnand %p758_p4, %p757_p2 }
  0x27   : > { %s223_s15 = sshll.u32 %s1262_s1, 4  ;;  %s224_s15 = int_to_ptr.hbm [resolvable:$true] %s223_s15 }
  0x28   : > { %p760_p6 = pneg %p759_p5 }
  0x2a   : > { %p765_p10 = pnand %p763_p8, %p760_p6 }
  0x2c   : > { %768 = shalt.err (!%p765_p10)
}
  0x2d   : > { %630 = dma.hbm_to_vmem [thread:$0]  (!%p1125_p13), %s250_s7, 128, %s252_s9, %s1132_s28  }
  0x2e   : > { %s991_s14 = smov [#allocation5]   ;;  %s271_s24 = sshll.u32 %s1246_s3, 4  ;;  %s272_s24 = int_to_ptr.hbm [resolvable:$true] %s271_s24 }
  0x2f   : > { %s225_s16 = sshll.u32 %s991_s14, 4  ;;  %s992_s27 = smov [#allocation8]   ;;  %s226_s16 = int_to_ptr.vmem [resolvable:$true] %s225_s16 }
  0x30   : > { %626 = dma.hbm_to_vmem [thread:$0]  (!%p1102_p0), %s224_s15, 16, %s226_s16, [#allocation6]  }
  0x31   : > { %s273_s8 = sshll.u32 %s992_s27, 4  ;;  %s814_s21 = sshra.s32 %s272_s24, 4  ;;  %s274_s8 = int_to_ptr.vmem [resolvable:$true] %s273_s8  ;;  %s815_s21 = int_to_ptr.hbm [resolvable:$true] %s814_s21 }
  0x32   : > { %s816_s0 = scalar_lea.hbm %s815_s21, 8  ;;  %s821_s13 = scalar_lea.hbm %s1246_s3, 8 }
  0x33   : > { %p817_p2 = scmp.ne.s32.totalorder %s815_s21, %s816_s0  ;;  %p823_p0 = scmp.lt.s32.totalorder %s821_s13, %s816_s0 }
  0x35   : > { %p819_p5 = pnand %p817_p2, %p758_p4 }
  0x37   : > { %p820_p6 = pneg %p819_p5 }
  0x39   : > { %p825_p8 = pnand %p823_p0, %p820_p6 }
  0x3b   : > { %828 = shalt.err (!%p825_p8)
}
  0x3c   : > { %633 = dma.hbm_to_vmem [thread:$0]  (!%p1125_p13), %s272_s24, 128, %s274_s8, %s1132_s28  }
  0x3d   : > { %282 = sbr.rel (%p1093_p11) target bundleno = 265 (0x109), region = 36 }
  0x42   : > { %937 = dma.done.wait (%p105_p1), [#allocation3], 16  }
  0x43   : > { %939 = vsyncadd (%p105_p1), [#allocation3], 4294967280 }
  0x44   : > { %941 = dma.done.wait (%p105_p1), [#allocation6], 16  }
  0x45   : > { %943 = vsyncadd (%p105_p1), [#allocation6], 4294967280  ;;  %s294_s1 = sand.u32 1, %s1063_s26   ;;  %s296_s24 = sand.u32 1, %s975_s22  }
  0x46   : > { %s594_s11 = sshll.u32 %s296_s24, 3  ;;  %s295_s10 = scalar_lea.sflag [#allocation3], %s294_s1 }
  0x47   : > { %s298_s15 = scalar_lea.vmem [#allocation7], %s594_s11 }
  0x48   : > { %945 = dma.done.wait (%p1073_p3), %s295_s10, 256  }
  0x49   : > { %947 = vsyncadd (%p1073_p3), %s295_s10, 4294967040  ;;  %v356_v0 = vld [vmem:[#allocation2] sm:$0x1]  ;;  %v357_v1 = vld [vmem:[#allocation5] sm:$0x1]  ;;  %vm360_vm0 = vcmask 1040384   ;;  %v388_v14 = vlaneseq  ;;  %s431_s27 = scalar_lea.hbm %s1248_s5, %s979_s23 }
  0x4a   : > { %v358_v2 = vsub.f32 %v357_v1, %v356_v0  ;;  %v379_v10 = vld [vmem:[%s298_s15] sm:$0xff]  ;;  %s597_s26 = sshll.u32 %s979_s23, 3  ;;  %s308_s29 = scalar_lea.vmem [#allocation8], %s594_s11  ;;  %v993_v27 = vmov 0.0  }
  0x4b   : > { %v382_v11 = vadd.f32 1e-06, %v379_v10  ;;  %v380_v16 = vld [vmem:[%s308_s29] sm:$0xff]  ;;  %v389_v17 = vshrl.u32 %v388_v14, 7  ;;  %v390_v20 = vstv %s597_s26  ;;  %s1179_s28 = sand.u32 1, %s963_s19   ;;  %s435_s21 = sshll.u32 %s431_s27, 4  ;;  %s436_s21 = int_to_ptr.hbm [resolvable:$true] %s435_s21 }
  0x4c   : > { %v359_v3 = vmul.f32 %v358_v2, %v358_v2  ;;  %v381_v18 = vsub.f32 0.0, %v380_v16  ;;  %s344_s14 = scalar_lea.vmem [#allocation10], %s1179_s28  ;;  %s409_s0 = scalar_lea.sflag [#allocation11], %s1179_s28 }
  0x4d   : > { %722 = vlog2.f32 %v382_v11  ;;  %v391_v21 = vadd.s32 %v390_v20, %v389_v17  ;;  %355 = vst [vmem:[%s344_s14] sm:$0x1] %v993_v27  ;;  %s433_s8 = sshll.u32 %s344_s14, 4  ;;  %s858_s7 = sshra.s32 %s436_s21, 4  ;;  %s434_s8 = int_to_ptr.vmem [resolvable:$true] %s433_s8  ;;  %s859_s7 = int_to_ptr.hbm [resolvable:$true] %s858_s7 }
  0x4e   : > { %v361_v4 = vsel %vm360_vm0, %v359_v3, 0.0  ;;  %s860_s9 = scalar_lea.hbm %s859_s7, 1  ;;  %s864_s24 = scalar_lea.hbm %s1248_s5, 2 }
  0x4f   : > { %362 = vadd.xlane.f32.xlu0 %v361_v4  ;;  %vm392_vm1 = vcmp.lt.s32.totalorder %v391_v21, 8  ;;  %p861_p1 = scmp.ne.s32.totalorder %s859_s7, %s860_s9  ;;  %p865_p13 = scmp.lt.s32.totalorder %s859_s7, %s1248_s5 }
  0x50   : > { %p866_p4 = scmp.lt.s32.totalorder %s864_s24, %s860_s9 }
  0x51   : > { %p862_p3 = pnand %p861_p1, %p1080_p7 }
  0x52   : > { %p867_p10 = por %p866_p4, %p865_p13 }
  0x53   : > { %v723_v15 = vpop.eup %722  ;;  %p863_p11 = pneg %p862_p3 }
  0x54   : > { %v384_v19 = vmul.f32 0.6931472, %v723_v15  ;;  %v394_v31 = vld [vmem:[%s344_s14] sm:$0x1] }
  0x55   : > { %p868_p2 = pnand %p867_p10, %p863_p11 }
  0x56   : > { %v385_v22 = vmul.f32 %v384_v19, %v381_v18 }
  0x58   : > { %v393_v23 = vsel %vm392_vm1, %v385_v22, 0.0 }
  0x59   : > { %v395_v24 = vrot.slane %v393_v23, 4 }
  0x5b   : > { %v396_v25 = vadd.f32 %v395_v24, %v393_v23 }
  0x5d   : > { %v397_v26 = vrot.slane %v396_v25, 2 }
  0x5f   : > { %v398_v28 = vadd.f32 %v397_v26, %v396_v25 }
  0x61   : > { %v399_v29 = vrot.slane %v398_v28, 1 }
  0x63   : > { %v400_v30 = vadd.f32 %v399_v29, %v398_v28 }
  0x65   : > { %v401_v32 = vadd.f32 %v400_v30, %v394_v31 }
  0x67   : > { %402 = vst [vmem:[%s344_s14] sm:$0x1] %v401_v32 }
  0xc2   : > { %v363_v5 = vpop.xlane.xlu0 %362 }
  0xc3   : > { %v364_v6 = vrot.slane %v363_v5, 4 }
  0xc5   : > { %v365_v7 = vadd.f32 %v364_v6, %v363_v5 }
  0xc7   : > { %v366_v8 = vrot.slane %v365_v7, 2 }
  0xc9   : > { %v367_v9 = vadd.f32 %v366_v8, %v365_v7 }
  0xcb   : > { %v368_v12 = vrot.slane %v367_v9, 1 }
  0xcd   : > { %v369_v13 = vadd.f32 %v368_v12, %v367_v9 }
  0xcf   : > { %602 = vpush %v369_v13 }
  0xd0   : > { %871 = shalt.err (!%p868_p2)
}
  0xd1   : > { %617 = dma.vmem_to_hbm [thread:$0]  (%p1080_p7), %s434_s8, 16, %s436_s21, %s409_s0  }
  0xd2   : > { %p372_p5 = scmp.eq.s32.totalorder %s979_s23, 0  ;;  %s596_s15 = sshll.u32 %s1179_s28, 3 }
  0xd3   : > { %s418_s12 = scalar_lea.hbm %s1247_s4, %s597_s26  ;;  %s338_s9 = scalar_lea.vmem [#allocation9], %s596_s15 }
  0xd4   : > { %s373_s29 = scalar_select %p372_p5, 1, 0 }
  0xd5   : > { %s420_s13 = sshll.u32 %s338_s9, 4  ;;  %s422_s24 = sshll.u32 %s418_s12, 4  ;;  %s421_s13 = int_to_ptr.vmem [resolvable:$true] %s420_s13  ;;  %s423_s24 = int_to_ptr.hbm [resolvable:$true] %s422_s24 }
  0xd6   : > { %s374_s27 = scvt.s32.f32 %s373_s29  ;;  %s404_s8 = scalar_lea.sflag [#allocation4], %s1179_s28 }
  0xd7   : > { %s886_s21 = sshra.s32 %s423_s24, 4  ;;  %s892_s10 = scalar_lea.hbm %s1247_s4, 16  ;;  %s887_s21 = int_to_ptr.hbm [resolvable:$true] %s886_s21 }
  0xd8   : > { %s888_s23 = scalar_lea.hbm %s887_s21, 8  ;;  %p893_p1 = scmp.lt.s32.totalorder %s887_s21, %s1247_s4 }
  0xd9   : > { %p889_p6 = scmp.ne.s32.totalorder %s887_s21, %s888_s23  ;;  %p894_p3 = scmp.lt.s32.totalorder %s892_s10, %s888_s23 }
  0xdb   : > { %p890_p0 = pnand %p889_p6, %p1080_p7  ;;  %p895_p11 = por %p894_p3, %p893_p1 }
  0xdd   : > { %p891_p8 = pneg %p890_p0 }
  0xdf   : > { %p896_p13 = pnand %p895_p11, %p891_p8 }
 0x100   : > { %s603_s7 = spop %602 }
 0x101   : > { %s371_s1 = smul.f32 0.125, %s603_s7 }
 0x103   : > { %s375_s11 = smul.f32 %s374_s27, %s371_s1 }
 0x105   : > { %v376_v33 = vstv %s375_s11 }
 0x106   : > { %378 = vst [vmem:[%s338_s9] sm:$0xff] %v376_v33 }
 0x107   : > { %899 = shalt.err (!%p896_p13)
}
 0x108   : > { %616 = dma.vmem_to_hbm [thread:$0]  (%p1080_p7), %s421_s13, 128, %s423_s24, %s404_s8  }
 0x109 PF: > { %s447_s28 = sand.u32 1, %s959_s18   ;;  %p635_p4 = pnand %p586_p12, %p1085_p9 }
 0x10a   : > { %s448_s14 = scalar_lea.sflag [#allocation4], %s447_s28 }
 0x10b   : > { %p636_p10 = pneg %p635_p4 }
 0x10d   : > { %949 = dma.done.wait (%p636_p10), %s448_s14, 128  }
 0x10e   : > { %951 = vsyncadd (%p636_p10), %s448_s14, 4294967168  ;;  %s458_s16 = scalar_lea.sflag [#allocation11], %s447_s28 }
 0x10f   : > { %953 = dma.done.wait (%p636_p10), %s458_s16, 16  }
 0x110   : > { %955 = vsyncadd (%p636_p10), %s458_s16, 4294967280  ;;  %s24_s25 = sadd.s32 1, %s987_s25   ;;  %s1263_s23 = sld [smem:[#allocation17_spill]] }
 0x111   : > { %p21_p2 = scmp.ge.s32.totalorder %s24_s25, 4   ;;  %s1264_s24 = sld [smem:[#allocation18_spill]] }
 0x112   : > { %s1265_s18 = smov %s963_s19  ;;  %s1266_s19 = smov %s967_s20 }
 0x113   : > { %s1267_s20 = smov %s1120_s17  ;;  %s1268_s21 = smov %s975_s22 }
 0x114   : > { %s1233_s22 = smov 0   ;;  %23 = sbr.rel (!%p21_p2) target bundleno = 12 (0xc), region = 120 }
 0x119   :  { %463 = vsyncpa [#allocation3], 1 }
 0x11a   :  { %465 = vsyncpa [#allocation3 + $0x1], 1 }
 0x11b   :  { %466 = vsyncpa [#allocation6], 1 }
 0x11c   :  { %467 = vsyncpa [#allocation4], 1 }
 0x11d   :  { %469 = vsyncpa [#allocation4 + $0x1], 1 }
 0x11e   :  { %470 = vsyncpa [#allocation11], 1 }
 0x11f   :  { %472 = vsyncpa [#allocation11 + $0x1], 1 }

</bundles_post_ra>
